<compile_context>
chip_gen: v5e
topology: v5e:2x2
jax: 0.10.0
libtpu: 0.0.40
codegen_flags: <defaults>
</compile_context>

<pallas_src>
import functools

import jax
import jax.numpy as jnp
from jax.experimental import pallas as pl
from jax.experimental.pallas import tpu as pltpu


def _nan_loss_kernel(mask_logit_ref, mask_tgt_ref, seg_logit_ref, seg_lbl_ref,
                     out_ref, acc_ref, *, inv_n):
    t = pl.program_id(2)            # pixel-tile axis (reduction, "arbitrary", innermost)
    nt = pl.num_programs(2)

    @pl.when(t == 0)
    def _init():
        acc_ref[...] = jnp.zeros_like(acc_ref)

    # ---- loss_ss: BCEWithLogitsLoss per-pixel term on this tile -----------------
    x = mask_logit_ref[...].astype(jnp.float32)            # (rt, 128)
    y = mask_tgt_ref[...].astype(jnp.float32)              # .float() happens in-kernel
    # numerically stable: max(x,0) - x*y + log(1 + exp(-|x|))
    bce = jnp.maximum(x, 0.0) - x * y + jnp.log1p(jnp.exp(-jnp.abs(x)))

    # ---- loss_gp: CrossEntropyLoss per-pixel term on this tile ------------------
    # seg block is (C, rt, 128): class axis leads, pixels are (sublane, lane)-dense,
    # so the class reduction is an across-vreg (VPU) reduction — no transpose needed.
    logits = seg_logit_ref[...].astype(jnp.float32)        # (C, rt, 128)
    labels = seg_lbl_ref[...].astype(jnp.int32)            # (rt, 128), cast in-kernel
    C = logits.shape[0]
    m = jnp.max(logits, axis=0)                            # (rt, 128)
    lse = m + jnp.log(jnp.sum(jnp.exp(logits - m[None]), axis=0))
    cls_iota = jax.lax.broadcasted_iota(jnp.int32, (C, 1, 1), 0)   # not materialized full-shape
    picked = jnp.sum(jnp.where(cls_iota == labels[None], logits, 0.0), axis=0)

    # BCE (N*1*H*W elems) and CE (N*H*W pixels) share the same mean denominator, so
    # accumulate the raw per-pixel sum and scale once at finalize.
    per_px = bce + (lse - picked)                          # (rt, 128)

    # Fold rows into the (8,128) accumulator with across-vreg VPU adds: no per-step XLU
    # cross-lane reduce, no vreg->SMEM scalar round-trip in the loop-carried chain.
    rt = per_px.shape[0]
    nfull = (rt // 8) * 8
    if nfull:
        acc_ref[...] += per_px[:nfull].reshape(nfull // 8, 8, 128).sum(axis=0)
    rem = rt - nfull
    if rem:                                                # tiny-tile tail (rt < 8, etc.)
        acc_ref[0:rem, :] += per_px[nfull:]

    @pl.when(t == nt - 1)
    def _fin():
        out_ref[...] = acc_ref[...] * inv_n


def _pick_rows_tile(total_rows: int, num_classes: int) -> int:
    """Largest lane-dense (rows x 128) tile such that:
       * the seg-logit block stays <= ~8 MiB, and
       * the double-buffered footprint of all four streams stays <= ~40 MiB
         (fits v7x's 64 MiB physical VMEM with headroom; tiny vs v5e/v6e's 128 MiB)."""
    seg_budget = 8 * 1024 * 1024
    total_budget = 40 * 1024 * 1024
    per_row_seg = num_classes * 128 * 4
    per_row_all = (num_classes + 3) * 128 * 4              # f32-equivalent upper bound per row
    cap = min(seg_budget // per_row_seg, total_budget // (2 * per_row_all), 4096)
    cap = max(int(cap), 8)
    if total_rows <= cap:
        return total_rows                                  # single full-extent tile (layout-legal)
    for step in (32, 8):                                   # prefer multiples of 32 (packed dtypes)
        best = 0
        for rt in range(step, cap + 1, step):
            if total_rows % rt == 0:
                best = rt
        if best:
            return best
    # Never silently fall back to a full-height tile (can blow v7x's 64 MiB VMEM).
    # TODO(synk): support ragged row counts via a pl.cdiv grid + masked last tile.
    raise ValueError(
        f"H*W/128 = {total_rows} has no multiple-of-8 divisor <= {cap}; "
        "pad the spatial size or add ragged-tile masking.")


def nan_loss(pred, target):
    """pred:   {'mask': (N,1,H,W) logits, 'seg': (N,C,H,W) logits, 'ins': (N,D)}
       target: {'mask': (N,H,W) {0,1} any dtype, 'seg': (N,H,W) int labels in [0,C), 'ins': (N,D)}"""
    mask_logit = pred['mask']
    seg_logit = pred['seg']
    mask_tgt = target['mask']
    seg_lbl = target['seg']

    N, _, H, W = mask_logit.shape
    C = seg_logit.shape[1]
    hw = H * W
    assert hw % 128 == 0, "H*W must be a multiple of 128 (see TODO for ragged tails)"
    R = hw // 128
    rt = _pick_rows_tile(R, C)
    T = R // rt

    # Split the pixel range across a second "parallel" axis when the batch axis alone
    # can't feed both v7x TensorCores (odd / singleton N).  No effect on v5e/v6e (1 TC).
    n_chunks = 2 if (N % 2 == 1 and T % 2 == 0) else 1
    tpc = T // n_chunks

    # Contiguity-preserving reshapes only: no transpose, no dtype widening in the wrapper.
    mask_logit3 = mask_logit.reshape(N, R, 128)
    mask_tgt3 = mask_tgt.reshape(N, R, 128)        # native dtype; cast in-kernel
    seg_logit4 = seg_logit.reshape(N, C, R, 128)
    seg_lbl3 = seg_lbl.reshape(N, R, 128)          # native dtype; cast in-kernel

    inv_n = 1.0 / float(N * hw)                    # shared mean denominator of BCE and CE

    itemsize = lambda a: jnp.dtype(a.dtype).itemsize
    step_bytes = rt * 128 * (C * itemsize(seg_logit4) + itemsize(mask_logit3)
                             + itemsize(mask_tgt3) + itemsize(seg_lbl3))
    # Explicit scoped-VMEM limit: covers the double-buffered streams with headroom, stays
    # >= 32 MiB (v5e default is only 16 MiB) and <= 48 MiB (fits v7x's 64 MiB physical VMEM).
    vmem_limit = int(min(max(2 * step_bytes + (4 << 20), 32 << 20), 48 << 20))

    kernel = functools.partial(_nan_loss_kernel, inv_n=inv_n)

    out = pl.pallas_call(
        kernel,
        out_shape=jax.ShapeDtypeStruct((N, n_chunks, 8, 128), jnp.float32),
        grid=(N, n_chunks, tpc),
        in_specs=[
            pl.BlockSpec((None, rt, 128),
                         lambda n, c, t, tpc=tpc: (n, c * tpc + t, 0)),      # mask logits
            pl.BlockSpec((None, rt, 128),
                         lambda n, c, t, tpc=tpc: (n, c * tpc + t, 0)),      # mask target (native dtype)
            pl.BlockSpec((None, C, rt, 128),
                         lambda n, c, t, tpc=tpc: (n, 0, c * tpc + t, 0)),   # seg logits, NCHW as-is
            pl.BlockSpec((None, rt, 128),
                         lambda n, c, t, tpc=tpc: (n, c * tpc + t, 0)),      # seg labels (native dtype)
        ],
        out_specs=pl.BlockSpec((None, None, 8, 128),
                               lambda n, c, t: (n, c, 0, 0)),
        scratch_shapes=[pltpu.VMEM((8, 128), jnp.float32)],
        compiler_params=pltpu.CompilerParams(
            dimension_semantics=("parallel", "parallel", "arbitrary"),
            vmem_limit_bytes=vmem_limit,
        ),
    )(mask_logit3, mask_tgt3, seg_logit4, seg_lbl3)

    # loss_ins: the tiny MSE is cheaper as one XLA mean than as two extra DMA streams per step.
    mse = jnp.mean((pred['ins'].astype(jnp.float32) - target['ins'].astype(jnp.float32)) ** 2)

    # Tiny final cross-lane combine of the per-(batch, chunk) (8,128) partial-loss blocks.
    return jnp.sum(out) + mse


def _reference(pred, target):
    # pure-JAX reference for sanity checking
    x = pred['mask'].astype(jnp.float32)
    y = target['mask'][:, None].astype(jnp.float32)
    bce = jnp.mean(jnp.maximum(x, 0.0) - x * y + jnp.log1p(jnp.exp(-jnp.abs(x))))
    logits = pred['seg'].astype(jnp.float32)                  # (N,C,H,W)
    lbl = target['seg'].astype(jnp.int32)                     # (N,H,W)
    logp = jax.nn.log_softmax(logits, axis=1)
    picked = jnp.take_along_axis(logp, lbl[:, None], axis=1)[:, 0]
    ce = -jnp.mean(picked)
    mse = jnp.mean((pred['ins'].astype(jnp.float32) - target['ins'].astype(jnp.float32)) ** 2)
    return bce + ce + mse


if __name__ == "__main__":
    key = jax.random.PRNGKey(0)
    k1, k2, k3, k4, k5, k6 = jax.random.split(key, 6)

    N, C, H, W, D = 2, 4, 16, 16, 128

    pred = {
        'mask': jax.random.normal(k1, (N, 1, H, W), jnp.float32),
        'seg':  jax.random.normal(k2, (N, C, H, W), jnp.float32),
        'ins':  jax.random.normal(k3, (N, D), jnp.float32),
    }
    target = {
        'mask': jax.random.bernoulli(k4, 0.5, (N, H, W)).astype(jnp.float32),
        'seg':  jax.random.randint(k5, (N, H, W), 0, C, jnp.int32),
        'ins':  jax.random.normal(k6, (N, D), jnp.float32),
    }

    loss = jax.block_until_ready(nan_loss(pred, target))
    ref = jax.block_until_ready(_reference(pred, target))
    assert jnp.allclose(loss, ref, rtol=1e-5, atol=1e-5), (loss, ref)
    print("KERNEL_OK")
</pallas_src>

<mosaic_0001>
module attributes {stable_mosaic.version = 11 : i64} {
  func.func @_nan_loss_kernel(%arg0: i32, %arg1: i32, %arg2: i32, %arg3: memref<1x2x128xf32, #tpu.memory_space<vmem>>, %arg4: memref<1x2x128xf32, #tpu.memory_space<vmem>>, %arg5: memref<1x4x2x128xf32, #tpu.memory_space<vmem>>, %arg6: memref<1x2x128xi32, #tpu.memory_space<vmem>>, %arg7: memref<1x1x8x128xf32, #tpu.memory_space<vmem>>, %arg8: memref<8x128xf32, #tpu.memory_space<vmem>>) attributes {dimension_semantics = [#tpu.dimension_semantics<parallel>, #tpu.dimension_semantics<parallel>, #tpu.dimension_semantics<arbitrary>], iteration_bounds = array<i64: 2, 1, 1>, scalar_prefetch = 0 : i64, scratch_operands = 1 : i64, tpu.core_type = #tpu.core_type<tc>, window_params = [{transform_indices = @transform_0, window_bounds = array<i64: 1, 2, 128>}, {transform_indices = @transform_1, window_bounds = array<i64: 1, 2, 128>}, {transform_indices = @transform_2, window_bounds = array<i64: 1, 4, 2, 128>}, {transform_indices = @transform_3, window_bounds = array<i64: 1, 2, 128>}, {transform_indices = @transform_4, window_bounds = array<i64: 1, 1, 8, 128>}]} {
    %c0_i32 = arith.constant 0 : i32
    %0 = arith.cmpi eq, %arg2, %c0_i32 : i32
    %1 = arith.extui %0 : i1 to i32
    %c0_i32_0 = arith.constant 0 : i32
    %2 = arith.cmpi ne, %1, %c0_i32_0 : i32
    scf.if %2 {
      %cst_24 = arith.constant 0.000000e+00 : f32
      %45 = vector.broadcast %cst_24 : f32 to vector<8x128xf32>
      %c0_25 = arith.constant 0 : index
      %c0_26 = arith.constant 0 : index
      %46 = vector.load %arg8[%c0_25, %c0_26] : memref<8x128xf32, #tpu.memory_space<vmem>>, vector<8x128xf32>
      tpu.vector_store %arg8[%c0_25, %c0_26], %45 {strides = array<i32>} : memref<8x128xf32, #tpu.memory_space<vmem>>, vector<8x128xf32>,
    } else {
    }
    %c0 = arith.constant 0 : index
    %c0_1 = arith.constant 0 : index
    %c0_2 = arith.constant 0 : index
    %3 = vector.load %arg3[%c0, %c0_1, %c0_2] : memref<1x2x128xf32, #tpu.memory_space<vmem>>, vector<1x2x128xf32>
    %4 = vector.shape_cast %3 : vector<1x2x128xf32> to vector<2x128xf32>
    %c0_3 = arith.constant 0 : index
    %c0_4 = arith.constant 0 : index
    %c0_5 = arith.constant 0 : index
    %5 = vector.load %arg4[%c0_3, %c0_4, %c0_5] : memref<1x2x128xf32, #tpu.memory_space<vmem>>, vector<1x2x128xf32>
    %6 = vector.shape_cast %5 : vector<1x2x128xf32> to vector<2x128xf32>
    %cst = arith.constant 0.000000e+00 : f32
    %7 = vector.broadcast %cst : f32 to vector<2x128xf32>
    %8 = arith.maximumf %4, %7 : vector<2x128xf32>
    %9 = arith.mulf %4, %6 : vector<2x128xf32>
    %10 = arith.subf %8, %9 : vector<2x128xf32>
    %11 = math.absf %4 : vector<2x128xf32>
    %cst_6 = arith.constant 0.000000e+00 : f32
    %12 = vector.broadcast %cst_6 : f32 to vector<2x128xf32>
    %13 = arith.subf %12, %11 : vector<2x128xf32>
    %14 = math.exp %13 : vector<2x128xf32>
    %15 = math.log1p %14 : vector<2x128xf32>
    %16 = arith.addf %10, %15 : vector<2x128xf32>
    %c0_7 = arith.constant 0 : index
    %c0_8 = arith.constant 0 : index
    %c0_9 = arith.constant 0 : index
    %c0_10 = arith.constant 0 : index
    %17 = vector.load %arg5[%c0_7, %c0_8, %c0_9, %c0_10] : memref<1x4x2x128xf32, #tpu.memory_space<vmem>>, vector<1x4x2x128xf32>
    %18 = vector.shape_cast %17 : vector<1x4x2x128xf32> to vector<4x2x128xf32>
    %c0_11 = arith.constant 0 : index
    %c0_12 = arith.constant 0 : index
    %c0_13 = arith.constant 0 : index
    %19 = vector.load %arg6[%c0_11, %c0_12, %c0_13] : memref<1x2x128xi32, #tpu.memory_space<vmem>>, vector<1x2x128xi32>
    %20 = vector.shape_cast %19 : vector<1x2x128xi32> to vector<2x128xi32>
    %cst_14 = arith.constant dense<0xFF800000> : vector<2x128xf32>
    %21 = vector.multi_reduction <maximumf>, %18, %cst_14 [0] : vector<4x2x128xf32> to vector<2x128xf32>
    %22 = vector.shape_cast %21 : vector<2x128xf32> to vector<1x2x128xf32>
    %23 = vector.broadcast %22 : vector<1x2x128xf32> to vector<4x2x128xf32>
    %24 = arith.subf %18, %23 : vector<4x2x128xf32>
    %25 = math.exp %24 : vector<4x2x128xf32>
    %cst_15 = arith.constant dense<0.000000e+00> : vector<2x128xf32>
    %26 = vector.multi_reduction <add>, %25, %cst_15 [0] : vector<4x2x128xf32> to vector<2x128xf32>
    %27 = math.log %26 : vector<2x128xf32>
    %28 = arith.addf %21, %27 : vector<2x128xf32>
    %29 = tpu.iota {dimensions = array<i32: 0>} : vector<4x1x1xi32>
    %30 = vector.shape_cast %20 : vector<2x128xi32> to vector<1x2x128xi32>
    %31 = vector.broadcast %29 : vector<4x1x1xi32> to vector<4x2x128xi32>
    %32 = vector.broadcast %30 : vector<1x2x128xi32> to vector<4x2x128xi32>
    %33 = arith.cmpi eq, %31, %32 : vector<4x2x128xi32>
    %cst_16 = arith.constant 0.000000e+00 : f32
    %34 = vector.broadcast %cst_16 : f32 to vector<4x2x128xf32>
    %35 = arith.select %33, %18, %34 : vector<4x2x128xi1>, vector<4x2x128xf32>
    %cst_17 = arith.constant dense<0.000000e+00> : vector<2x128xf32>
    %36 = vector.multi_reduction <add>, %35, %cst_17 [0] : vector<4x2x128xf32> to vector<2x128xf32>
    %37 = arith.subf %28, %36 : vector<2x128xf32>
    %38 = arith.addf %16, %37 : vector<2x128xf32>
    %c0_18 = arith.constant 0 : index
    %c0_19 = arith.constant 0 : index
    %39 = vector.load %arg8[%c0_18, %c0_19] : memref<8x128xf32, #tpu.memory_space<vmem>>, vector<2x128xf32>
    %40 = arith.addf %39, %38 : vector<2x128xf32>
    %c0_20 = arith.constant 0 : index
    %c0_21 = arith.constant 0 : index
    %41 = vector.load %arg8[%c0_20, %c0_21] : memref<8x128xf32, #tpu.memory_space<vmem>>, vector<2x128xf32>
    tpu.vector_store %arg8[%c0_20, %c0_21], %40 {strides = array<i32>} : memref<8x128xf32, #tpu.memory_space<vmem>>, vector<2x128xf32>,
    %c0_i32_22 = arith.constant 0 : i32
    %42 = arith.cmpi eq, %arg2, %c0_i32_22 : i32
    %43 = arith.extui %42 : i1 to i32
    %c0_i32_23 = arith.constant 0 : i32
    %44 = arith.cmpi ne, %43, %c0_i32_23 : i32
    scf.if %44 {
      %c0_24 = arith.constant 0 : index
      %c0_25 = arith.constant 0 : index
      %45 = vector.load %arg8[%c0_24, %c0_25] : memref<8x128xf32, #tpu.memory_space<vmem>>, vector<8x128xf32>
      %cst_26 = arith.constant 0.001953125 : f32
      %46 = vector.broadcast %cst_26 : f32 to vector<8x128xf32>
      %47 = arith.mulf %45, %46 : vector<8x128xf32>
      %c0_27 = arith.constant 0 : index
      %c0_28 = arith.constant 0 : index
      %c0_29 = arith.constant 0 : index
      %c0_30 = arith.constant 0 : index
      %48 = vector.load %arg7[%c0_27, %c0_28, %c0_29, %c0_30] : memref<1x1x8x128xf32, #tpu.memory_space<vmem>>, vector<1x1x8x128xf32>
      %49 = vector.shape_cast %48 : vector<1x1x8x128xf32> to vector<8x128xf32>
      %50 = vector.shape_cast %47 : vector<8x128xf32> to vector<1x1x8x128xf32>
      tpu.vector_store %arg7[%c0_27, %c0_28, %c0_29, %c0_30], %50 {strides = array<i32>} : memref<1x1x8x128xf32, #tpu.memory_space<vmem>>, vector<1x1x8x128xf32>,
    } else {
    }
    return
  }
  func.func @transform_0(%arg0: i32, %arg1: i32, %arg2: i32) -> (i32, i32, i32) {
    %c1_i32 = arith.constant 1 : i32
    %0 = arith.muli %arg1, %c1_i32 : i32
    %1 = arith.addi %0, %arg2 : i32
    %c0_i32 = arith.constant 0 : i32
    %c0_i32_0 = arith.constant 0 : i32
    return %arg0, %1, %c0_i32 : i32, i32, i32
  }
  func.func @transform_1(%arg0: i32, %arg1: i32, %arg2: i32) -> (i32, i32, i32) {
    %c1_i32 = arith.constant 1 : i32
    %0 = arith.muli %arg1, %c1_i32 : i32
    %1 = arith.addi %0, %arg2 : i32
    %c0_i32 = arith.constant 0 : i32
    %c0_i32_0 = arith.constant 0 : i32
    return %arg0, %1, %c0_i32 : i32, i32, i32
  }
  func.func @transform_2(%arg0: i32, %arg1: i32, %arg2: i32) -> (i32, i32, i32, i32) {
    %c1_i32 = arith.constant 1 : i32
    %0 = arith.muli %arg1, %c1_i32 : i32
    %1 = arith.addi %0, %arg2 : i32
    %c0_i32 = arith.constant 0 : i32
    %c0_i32_0 = arith.constant 0 : i32
    %c0_i32_1 = arith.constant 0 : i32
    return %arg0, %c0_i32, %1, %c0_i32_0 : i32, i32, i32, i32
  }
  func.func @transform_3(%arg0: i32, %arg1: i32, %arg2: i32) -> (i32, i32, i32) {
    %c1_i32 = arith.constant 1 : i32
    %0 = arith.muli %arg1, %c1_i32 : i32
    %1 = arith.addi %0, %arg2 : i32
    %c0_i32 = arith.constant 0 : i32
    %c0_i32_0 = arith.constant 0 : i32
    return %arg0, %1, %c0_i32 : i32, i32, i32
  }
  func.func @transform_4(%arg0: i32, %arg1: i32, %arg2: i32) -> (i32, i32, i32, i32) {
    %c0_i32 = arith.constant 0 : i32
    %c0_i32_0 = arith.constant 0 : i32
    %c0_i32_1 = arith.constant 0 : i32
    return %arg0, %arg1, %c0_i32, %c0_i32_0 : i32, i32, i32, i32
  }
}

</mosaic_0001>

<bundles_post_ra>
// kernel: tpu_custom_call.1
= control target key start
LH: loop header
LB: loop body
LE: loop exit
PB: predicated region body
PF: predicated region fallthrough
CT: control target
= control target key end

     0   :  { %s1208_s0 = inlined_call_operand.hbm [shape: f32[2,2,128], index: 0, kind: input, shape index: {}]   ;;  %s1209_s1 = inlined_call_operand.hbm [shape: f32[2,2,128], index: 1, kind: input, shape index: {}]   ;;  %s1210_s2 = inlined_call_operand.hbm [shape: f32[2,4,2,128], index: 2, kind: input, shape index: {}]   ;;  %s1211_s3 = inlined_call_operand.hbm [shape: s32[2,2,128], index: 3, kind: input, shape index: {}]   ;;  %s1212_s4 = inlined_call_operand.hbm [shape: f32[2,1,8,128], index: 4, kind: output, shape index: {}]  }
   0x1   :  { %1219 = sst [smem:[#allocation22_spill]] %s1208_s0 }
   0x2   :  { %1220 = sst [smem:[#allocation23_spill]] %s1209_s1 }
   0x3   :  { %9 = vsyncpa [#allocation4], 0 }
   0x4   :  { %11 = vsyncpa [#allocation4 + $0x1], 0 }
   0x5   :  { %12 = vsyncpa [#allocation7], 0 }
   0x6   :  { %14 = vsyncpa [#allocation7 + $0x1], 0 }
   0x7   :  { %15 = vsyncpa [#allocation10], 0 }
   0x8   :  { %17 = vsyncpa [#allocation10 + $0x1], 0 }
   0x9   :  { %18 = vsyncpa [#allocation5], 0 }
   0xa   :  { %20 = vsyncpa [#allocation5 + $0x1], 0  ;;  %s998_s15 = smov 0   ;;  %s1000_s16 = smov 0  }
   0xb   :  { %s1002_s17 = smov 0   ;;  %s1004_s18 = smov 0  }
   0xc   :  { %s1006_s19 = smov 0   ;;  %s1008_s20 = smov 0  }
   0xd LB: > { %1221 = sst [smem:[#allocation16_spill]] %s956_s17  ;;  %s1029_s21 = sadd.s32 4294967295, %s968_s20   ;;  %s968_s20 = sphi %s1008_s20, %s26_s20   ;;  %s964_s19 = sphi %s1006_s19, %s1240_s19   ;;  %s960_s18 = sphi %s1004_s18, %s1239_s18   ;;  %s956_s17 = sphi %s1002_s17, %s1238_s17   ;;  %s952_s16 = sphi %s1000_s16, %s1242_s16   ;;  %s948_s15 = sphi %s998_s15, %s1241_s15  }
   0xe   : > { %1222 = sst [smem:[#allocation17_spill]] %s964_s19  ;;  %s641_s22 = sadd.s32 4294967294, %s968_s20  }
   0xf   : > { %1223 = sst [smem:[#allocation18_spill]] %s968_s20  ;;  %s45_s23 = sadd.s32 1, %s964_s19 }
  0x10   : > { %s56_s24 = sadd.s32 1, %s956_s17  ;;  %p47_p0 = scmp.ge.s32.totalorder %s45_s23, 2 }
  0x11   : > { %p63_p1 = scmp.ne.s32.totalorder %s956_s17, %s952_s16  ;;  %p64_p2 = scmp.eq.s32.totalorder %s968_s20, 0 }
  0x12   : > { %p69_p3 = scmp.ne.s32.totalorder %s952_s16, %s948_s15  ;;  %s1244_s23 = smov (%p47_p0, %s45_s23), 0 }
  0x13   : > { %1224 = sst [smem:[#allocation19_spill]] %s1244_s23  ;;  %p1041_p4 = por %p64_p2, %p63_p1 }
  0x14   : > { %p70_p5 = scmp.eq.s32.totalorder %s1029_s21, 0  ;;  %s51_s26 = ssub.s32 %s964_s19, %s1244_s23 }
  0x15   : > { %p185_p6 = scmp.eq.s32.totalorder %s1029_s21, 1  ;;  %p54_p7 = scmp.eq.s32.totalorder %s51_s26, 0 }
  0x16   : > { %p1049_p8 = por %p70_p5, %p69_p3  ;;  %p191_p10 = scmp.eq.s32.totalorder %s641_s22, 1 }
  0x17   : > { %p1053_p9 = por %p185_p6, %p63_p1  ;;  %p643_p12 = scmp.ge.s32.totalorder %s968_s20, 2 }
  0x18   : > { %s1058_s29 = scalar_select %p54_p7, %s956_s17, %s56_s24  }
  0x19   : > { %p1060_p11 = por %p191_p10, %p69_p3  ;;  %p691_p13 = scmp.lt.s32.totalorder %s968_s20, 2 }
  0x1a   : > { %1228 = sst [smem:[#allocation20_spill]] %s1058_s29  ;;  %s1067_s5 = sand.u32 1, %s956_s17  }
  0x1b   : > { %s1229_s30 = scalar_select %p1060_p11, 1, 0 }
  0x1c   : > { %s1070_s6 = sshll.u32 %s1067_s5, 1  ;;  %s1073_s7 = sshll.u32 %s964_s19, 1 }
  0x1d   : > { %1230 = sst [smem:[#allocation21_spill]] %s1229_s30  ;;  %p1077_p0 = pnand %p691_p13, %p1041_p4 }
  0x1e   : > { %s232_s9 = sand.u32 1, %s968_s20   ;;  %s1232_s1 = sld [smem:[#allocation23_spill]] }
  0x1f   : > { %s236_s14 = scalar_lea.vmem [#allocation6], %s1070_s6  ;;  %s233_s24 = scalar_lea.sflag [#allocation7], %s232_s9 }
  0x20   : > { %s246_s22 = sshll.u32 %s236_s14, 4  ;;  %p653_p1 = scmp.ge.s32.totalorder %s968_s20, 1  ;;  %s247_s22 = int_to_ptr.vmem [resolvable:$true] %s246_s22 }
  0x21   : > { %p296_p2 = scmp.lt.s32.totalorder %s968_s20, 3  ;;  %s1234_s0 = sld [smem:[#allocation22_spill]] }
  0x22   : > { %s212_s9 = scalar_lea.sflag [#allocation4], %s1067_s5  ;;  %s278_s23 = scalar_lea.sflag [#allocation10], %s1067_s5 }
  0x23   : > { %p1091_p3 = pnand %p653_p1, %p296_p2 }
  0x24   : > { %s242_s12 = scalar_lea.hbm %s1232_s1, %s1073_s7  ;;  %s215_s1 = scalar_lea.vmem [#allocation3], %s1070_s6 }
  0x25   : > { %s244_s13 = sshll.u32 %s242_s12, 4  ;;  %s225_s14 = sshll.u32 %s215_s1, 4  ;;  %s245_s13 = int_to_ptr.hbm [resolvable:$true] %s244_s13  ;;  %s226_s14 = int_to_ptr.vmem [resolvable:$true] %s225_s14 }
  0x26   : > { %680 = dma.hbm_to_vmem [thread:$0]  (!%p1077_p0), %s245_s13, 32, %s247_s22, %s233_s24  }
  0x27   : > { %s221_s11 = scalar_lea.hbm %s1234_s0, %s1073_s7  ;;  %s648_s13 = sshll.u32 %s1067_s5, 3 }
  0x28   : > { %s223_s12 = sshll.u32 %s221_s11, 4  ;;  %s663_s22 = sshll.u32 %s964_s19, 3  ;;  %s224_s12 = int_to_ptr.hbm [resolvable:$true] %s223_s12 }
  0x29   : > { %677 = dma.hbm_to_vmem [thread:$0]  (!%p1077_p0), %s224_s12, 32, %s226_s14, %s212_s9  }
  0x2a   : > { %s264_s17 = scalar_lea.hbm %s1210_s2, %s663_s22  ;;  %s257_s10 = scalar_lea.vmem [#allocation8], %s648_s13 }
  0x2b   : > { %s265_s26 = sshll.u32 %s264_s17, 4  ;;  %s267_s11 = sshll.u32 %s257_s10, 4  ;;  %s266_s26 = int_to_ptr.hbm [resolvable:$true] %s265_s26  ;;  %s268_s11 = int_to_ptr.vmem [resolvable:$true] %s267_s11 }
  0x2c   : > { %s970_s1 = smov 32   ;;  %s971_s0 = smov 2  }
  0x2d   : > { %683 = dma.hbm_to_vmem [thread:$0]  (!%p1077_p0), %s266_s26, 128, %s268_s11, %s233_s24, %s970_s1, %s970_s1, %s971_s0  }
  0x2e   : > { %s287_s12 = scalar_lea.hbm %s1211_s3, %s1073_s7  ;;  %s281_s14 = scalar_lea.vmem [#allocation9], %s1070_s6 }
  0x2f   : > { %s291_s9 = sshll.u32 %s281_s14, 4  ;;  %s289_s19 = sshll.u32 %s287_s12, 4  ;;  %s292_s9 = int_to_ptr.vmem [resolvable:$true] %s291_s9  ;;  %s290_s19 = int_to_ptr.hbm [resolvable:$true] %s289_s19 }
  0x30   : > { %686 = dma.hbm_to_vmem [thread:$0]  (!%p1077_p0), %s290_s19, 32, %s292_s9, %s278_s23  }
  0x31   : > { %300 = sbr.rel (%p1091_p3) target bundleno = 119 (0x77), region = 36  ;;  %s1121_s17 = sand.u32 (!%p1091_p3), 1, %s952_s16  }
  0x32   : > { %s1124_s0 = sshll.u32 (!%p1091_p3), %s1121_s17, 1  ;;  %s303_s20 = scalar_lea.sflag (!%p1091_p3), [#allocation4], %s1121_s17 }
  0x33   : > { %s306_s29 = scalar_lea.vmem (!%p1091_p3), [#allocation3], %s1124_s0 }
  0x36   : > { %931 = dma.done.wait (%p1049_p8), %s303_s20, 32  }
  0x37   : > { %933 = vsyncadd (%p1049_p8), %s303_s20, 4294967264  ;;  %s312_s19 = sand.u32 1, %s1029_s21   ;;  %s316_s5 = scalar_lea.vmem [#allocation6], %s1124_s0 }
  0x38   : > { %s313_s30 = scalar_lea.sflag [#allocation7], %s312_s19 }
  0x39   : > { %935 = dma.done.wait (%p1049_p8), %s313_s30, 160  }
  0x3a   : > { %937 = vsyncadd (%p1049_p8), %s313_s30, 4294967136  ;;  %s656_s6 = sshll.u32 %s1121_s17, 3  ;;  %s333_s8 = scalar_lea.sflag [#allocation10], %s1121_s17 }
  0x3b   : > { %s326_s7 = scalar_lea.vmem [#allocation8], %s656_s6  ;;  %s336_s24 = scalar_lea.vmem [#allocation9], %s1124_s0 }
  0x3c   : > { %939 = dma.done.wait (%p1049_p8), %s333_s8, 32  }
  0x3d   : > { %941 = vsyncadd (%p1049_p8), %s333_s8, 4294967264  ;;  %v972_v0 = vmov 0.0   ;;  %vm410_vm0 = vcmask 1041408   ;;  %v1147_v1 = vld [vmem:[%s306_s29] sm:$0x3]  ;;  %s660_s21 = sshll.u32 %s960_s18, 3 }
  0x3e   : > { %385 = vst [vmem:[#allocation2] sm:$0xff] %v972_v0  ;;  %v405_v2 = vld [vmem:[%s326_s7] sm:$0x3]  ;;  %v391_v3 = vand.u32 2147483647, %v1147_v1  ;;  %v388_v50 = vmax.f32 %v1147_v1, 0.0  ;;  %s478_s13 = scalar_lea.hbm %s1212_s4, %s660_s21 }
  0x3f   : > { %v406_v4 = vld [vmem:[%s326_s7 + $0x2] sm:$0x3]  ;;  %v411_v5 = vsel %vm410_vm0, %v405_v2, -inf  ;;  %v407_v6 = vld [vmem:[%s326_s7 + $0x4] sm:$0x3]  ;;  %s376_s22 = scalar_lea.vmem [#allocation11], %s656_s6 }
  0x40   : > { %v408_v7 = vld [vmem:[%s326_s7 + $0x6] sm:$0x3]  ;;  %v392_v8 = vsub.f32 0.0, %v391_v3  ;;  %v412_v9 = vsel %vm410_vm0, %v406_v4, -inf  ;;  %v413_v10 = vsel %vm410_vm0, %v407_v6, -inf  ;;  %s480_s26 = sshll.u32 %s376_s22, 4  ;;  %s481_s26 = int_to_ptr.vmem [resolvable:$true] %s480_s26 }
  0x41   : > { %v414_v11 = vsel %vm410_vm0, %v408_v7, -inf  ;;  %v415_v12 = vmax.f32 %v411_v5, %v412_v9  ;;  %v409_v25 = vld [vmem:[%s336_s24] sm:$0x3]  ;;  %v387_v43 = vld [vmem:[%s316_s5] sm:$0x3]  ;;  %s482_s10 = sshll.u32 %s478_s13, 4  ;;  %s483_s10 = int_to_ptr.hbm [resolvable:$true] %s482_s10 }
  0x42   : > { %v393_v13 = vmul.f32 1.442695, %v392_v8  ;;  %v416_v14 = vmax.f32 %v413_v10, %v414_v11  ;;  %vm440_vm1 = vcmp.eq.s32.totalorder %v409_v25, 0  ;;  %vm441_vm2 = vcmp.eq.s32.totalorder %v409_v25, 1  ;;  %s467_s11 = scalar_lea.sflag [#allocation5], %s1121_s17  ;;  %s892_s1 = sshra.s32 %s483_s10, 4  ;;  %s893_s1 = int_to_ptr.hbm [resolvable:$true] %s892_s1 }
  0x43   : > { %v444_v32 = vsel %vm440_vm1, %v405_v2, 0.0  ;;  %v445_v33 = vsel %vm441_vm2, %v406_v4, 0.0  ;;  %vm442_vm3 = vcmp.eq.s32.totalorder %v409_v25, 2  ;;  %vm443_vm4 = vcmp.eq.s32.totalorder %v409_v25, 3  ;;  %s894_s12 = scalar_lea.hbm %s893_s1, 8  ;;  %s898_s9 = scalar_lea.hbm %s1212_s4, 16 }
  0x44   : > { %v417_v15 = vmax.f32 %v415_v12, %v416_v14  ;;  %744 = vpow2.f32 %v393_v13  ;;  %v448_v40 = vsel %vm410_vm0, %v444_v32, 0.0  ;;  %v449_v41 = vsel %vm410_vm0, %v445_v33, 0.0  ;;  %p895_p4 = scmp.ne.s32.totalorder %s893_s1, %s894_s12  ;;  %p899_p7 = scmp.lt.s32.totalorder %s893_s1, %s1212_s4 }
  0x45   : > { %v446_v42 = vsel %vm442_vm3, %v407_v6, 0.0  ;;  %v450_v48 = vadd.f32 %v449_v41, %v448_v40  ;;  %v389_v51 = vmul.f32 %v387_v43, %v1147_v1  ;;  %v447_v52 = vsel %vm443_vm4, %v408_v7, 0.0  ;;  %p900_p8 = scmp.lt.s32.totalorder %s898_s9, %s894_s12 }
  0x46   : > { %v418_v16 = vsub.f32 %v405_v2, %v417_v15  ;;  %v419_v17 = vsub.f32 %v406_v4, %v417_v15  ;;  %v420_v18 = vsub.f32 %v407_v6, %v417_v15  ;;  %v421_v19 = vsub.f32 %v408_v7, %v417_v15  ;;  %v457_v2 = vld [vmem:[#allocation2] sm:$0x3]  ;;  %p896_p5 = pnand %p895_p4, %p1053_p9 }
  0x47   : > { %v451_v49 = vsel %vm410_vm0, %v446_v42, 0.0  ;;  %v453_v56 = vsel %vm410_vm0, %v447_v52, 0.0  ;;  %v390_v57 = vsub.f32 %v388_v50, %v389_v51  ;;  %p901_p10 = por %p900_p8, %p899_p7 }
  0x48   : > { %v422_v20 = vmul.f32 1.442695, %v418_v16  ;;  %v424_v21 = vmul.f32 1.442695, %v419_v17  ;;  %v426_v22 = vmul.f32 1.442695, %v420_v18  ;;  %v452_v55 = vadd.f32 %v451_v49, %v450_v48  ;;  %p897_p6 = pneg %p896_p5 }
  0x49   : > { %v428_v23 = vmul.f32 1.442695, %v421_v19 }
  0x4a   : > { %746 = vpow2.f32 %v422_v20  ;;  %v745_v24 = vpop.eup %744  ;;  %v454_v61 = vadd.f32 %v453_v56, %v452_v55  ;;  %p902_p13 = pnand %p901_p10, %p897_p6 }
  0x4b   : > { %748 = vpow2.f32 %v424_v21  ;;  %v395_v26 = vadd.f32 1.0, %v745_v24  ;;  %v398_v34 = vmul.f32 -0.5, %v745_v24  ;;  %v401_v47 = vand.u32 2147483647, %v745_v24 }
  0x4c   : > { %750 = vpow2.f32 %v426_v22 }
  0x4d   : > { %752 = vpow2.f32 %v428_v23  ;;  %v399_v44 = vadd.f32 1.0, %v398_v34  ;;  %vm402_vm5 = vcmp.lt.f32.partialorder %v401_v47, 0.0004427343 }
  0x4e   : > { %754 = vlog2.f32 %v395_v26 }
  0x4f   : > { %v400_v54 = vmul.f32 %v745_v24, %v399_v44 }
  0x50   : > { %v747_v27 = vpop.eup %746 }
  0x51   : > { %v749_v28 = vpop.eup %748  ;;  %v430_v29 = vsel %vm410_vm0, %v747_v27, 0.0 }
  0x52   : > { %v751_v30 = vpop.eup %750  ;;  %v431_v31 = vsel %vm410_vm0, %v749_v28, 0.0 }
  0x53   : > { %v432_v35 = vadd.f32 %v431_v31, %v430_v29  ;;  %v433_v36 = vsel %vm410_vm0, %v751_v30, 0.0  ;;  %v753_v37 = vpop.eup %752 }
  0x54   : > { %v435_v39 = vsel %vm410_vm0, %v753_v37, 0.0  ;;  %v755_v46 = vpop.eup %754 }
  0x55   : > { %v434_v38 = vadd.f32 %v433_v36, %v432_v35  ;;  %v397_v53 = vmul.f32 0.6931472, %v755_v46 }
  0x57   : > { %v436_v45 = vadd.f32 %v435_v39, %v434_v38  ;;  %v403_v59 = vsel %vm402_vm5, %v400_v54, %v397_v53 }
  0x58   : > { %v404_v62 = vadd.f32 %v403_v59, %v390_v57 }
  0x59   : > { %756 = vlog2.f32 %v436_v45 }
  0x5f   : > { %v757_v58 = vpop.eup %756 }
  0x60   : > { %v438_v60 = vmul.f32 0.6931472, %v757_v58 }
  0x62   : > { %v439_v63 = vadd.f32 %v438_v60, %v417_v15 }
  0x64   : > { %v455_v0 = vsub.f32 %v439_v63, %v454_v61 }
  0x66   : > { %v456_v1 = vadd.f32 %v455_v0, %v404_v62 }
  0x68   : > { %v458_v3 = vadd.f32 %v457_v2, %v456_v1 }
  0x6a   : > { %459 = vst [vmem:[#allocation2] sm:$0x3] %v458_v3 }
  0x71   : > { %v463_v4 = vld [vmem:[#allocation2] sm:$0xff] }
  0x72   : > { %v464_v5 = vmul.f32 0.001953125, %v463_v4 }
  0x74   : > { %465 = vst [vmem:[%s376_s22] sm:$0xff] %v464_v5 }
  0x75   : > { %905 = shalt.err (!%p902_p13)
}
  0x76   : > { %672 = dma.vmem_to_hbm [thread:$0]  (%p1053_p9), %s481_s26, 128, %s483_s10, %s467_s11  }
  0x77 PF: > { %s1236_s20 = sld [smem:[#allocation18_spill]]  ;;  %s494_s29 = sand.u32 1, %s948_s15  }
  0x78   : > { %p688_p0 = pnand %p643_p12, %p1060_p11  ;;  %s495_s19 = scalar_lea.sflag [#allocation5], %s494_s29 }
  0x7a   : > { %p689_p1 = pneg %p688_p0 }
  0x7c   : > { %943 = dma.done.wait (%p689_p1), %s495_s19, 128  }
  0x7d   : > { %945 = vsyncadd (%p689_p1), %s495_s19, 4294967168  ;;  %s26_s20 = sadd.s32 1, %s1236_s20   ;;  %s1237_s30 = sld [smem:[#allocation16_spill]] }
  0x7e   : > { %p23_p2 = scmp.ge.s32.totalorder %s26_s20, 4   ;;  %s1238_s17 = sld [smem:[#allocation20_spill]] }
  0x7f   : > { %s1239_s18 = sld [smem:[#allocation17_spill]]  ;;  %s1241_s15 = smov %s952_s16 }
  0x80   : > { %s1240_s19 = sld [smem:[#allocation19_spill]]  ;;  %25 = sbr.rel (!%p23_p2) target bundleno = 13 (0xd), region = 126 }
  0x83   : > { %s1242_s16 = smov %s1237_s30 }
  0x85   :  { %501 = vsyncpa [#allocation4], 1 }
  0x86   :  { %503 = vsyncpa [#allocation4 + $0x1], 1 }
  0x87   :  { %504 = vsyncpa [#allocation7], 1 }
  0x88   :  { %506 = vsyncpa [#allocation7 + $0x1], 1 }
  0x89   :  { %507 = vsyncpa [#allocation10], 1 }
  0x8a   :  { %509 = vsyncpa [#allocation10 + $0x1], 1 }
  0x8b   :  { %510 = vsyncpa [#allocation5], 1 }
  0x8c   :  { %512 = vsyncpa [#allocation5 + $0x1], 1 }

</bundles_post_ra>
